<compile_context>
chip_gen: v7x
topology: tpu7x:2x2x1
jax: 0.10.0
libtpu: 0.0.40
codegen_flags: <defaults>
</compile_context>

<pallas_src>
import functools
import math

import jax
import jax.numpy as jnp
from jax import lax
from jax.experimental import pallas as pl
from jax.experimental.pallas import tpu as pltpu

_MIB = 1024 * 1024


# ---------------------------------------------------------------------------
# Generation-aware VMEM budgeting.
# ---------------------------------------------------------------------------
@functools.lru_cache(maxsize=None)
def _vmem_limit_bytes():
    """Scoped-VMEM limit: ~5/8 of physical, capped at 96 MiB.

    v5e/v6e (128 MiB physical) -> 80 MiB; v7x (64 MiB physical) -> 40 MiB.
    """
    phys = 128 * _MIB
    try:
        phys = int(getattr(pltpu.get_tpu_info(), "vmem_capacity_bytes", phys))
    except Exception:
        pass
    return int(min(96 * _MIB, (phys * 5) // 8))


@functools.lru_cache(maxsize=None)
def _block_budget_bytes():
    """Per-block byte target.

    Input + output blocks are each double-buffered, so ~4x this is in flight;
    1/8th of the VMEM limit gives 8 MiB blocks on v5e/v6e and 5 MiB on v7x.
    """
    return int(min(8 * _MIB, max(_MIB, _vmem_limit_bytes() // 8)))


# ---------------------------------------------------------------------------
# Permutation plumbing (wrapper side, all free reshapes).
# ---------------------------------------------------------------------------
def _coalesce(shape, dims):
    """Drop size-1 axes and merge adjacent input axes that stay adjacent and
    in-order under `dims`.

    Returns (new_shape, new_dims) such that
        transpose(x.reshape(new_shape), new_dims).ravel()
        == transpose(x, dims).ravel()
    """
    keep = [ax for ax in range(len(shape)) if shape[ax] != 1]
    if not keep:
        return (1,), (0,)
    remap = {ax: i for i, ax in enumerate(keep)}
    shape = tuple(shape[ax] for ax in keep)
    dims = tuple(remap[d] for d in dims if d in remap)

    ndim = len(shape)
    pos = {d: j for j, d in enumerate(dims)}      # input axis -> output position
    groups = [[0]]
    for ax in range(1, ndim):
        if pos[ax] == pos[ax - 1] + 1:
            groups[-1].append(ax)
        else:
            groups.append([ax])
    new_shape = tuple(math.prod(shape[g[0]:g[-1] + 1]) for g in groups)
    group_of = {ax: gi for gi, g in enumerate(groups) for ax in g}
    new_dims = []
    for d in dims:
        gi = group_of[d]
        if not new_dims or new_dims[-1] != gi:
            new_dims.append(gi)
    return new_shape, tuple(new_dims)


def _maybe_pack_minor(x, dims):
    """Pack sub-32-bit dtypes along an untouched minor (lane) axis.

    Sub-32-bit dtypes pack along sublanes on TPU, so relayouts on them cost
    2-4x more vregs / DMA descriptors.  When the permutation keeps the last
    axis last we bitcast groups of 2 (16-bit) or 4 (8-bit) trailing elements
    into one uint32 lane element, permute the packed array, and bitcast back.
    Returns (array, dims, unpack_fn_or_None).
    """
    itemsize = x.dtype.itemsize
    if (x.ndim < 2 or itemsize not in (1, 2) or x.dtype == jnp.bool_
            or dims[-1] != x.ndim - 1):
        return x, dims, None
    ratio = 4 // itemsize
    last = x.shape[-1]
    if last == 0 or last % ratio != 0:
        return x, dims, None
    orig_dtype = x.dtype
    packed = lax.bitcast_convert_type(
        x.reshape(x.shape[:-1] + (last // ratio, ratio)), jnp.uint32)

    def unpack(y):
        z = lax.bitcast_convert_type(y, orig_dtype)       # adds trailing dim
        return z.reshape(z.shape[:-2] + (z.shape[-2] * ratio,))

    return packed, dims, unpack


def _choose_tiles(shape, blocked, multiples, itemsize, budget, maximums=None):
    """Pick (8,128)-aligned tile sizes so one block stays under `budget` bytes
    (the full extent is always a legal block dim)."""
    maximums = maximums or {}
    tiles = {a: min(shape[a], maximums.get(a, shape[a])) for a in blocked}

    def nbytes():
        return math.prod(tiles.values()) * itemsize

    while nbytes() > budget:
        shrinkable = [a for a in blocked if tiles[a] > multiples[a]]
        if not shrinkable:
            break
        a = max(shrinkable, key=lambda ax: tiles[ax])
        m = multiples[a]
        new = max(m, ((tiles[a] // 2) // m) * m)
        if new >= tiles[a]:
            new = m
        tiles[a] = new
    return tiles


# ---------------------------------------------------------------------------
# Kernels.
# ---------------------------------------------------------------------------
def _transpose_kernel(x_ref, o_ref, *, dims):
    # Blocked in-VMEM relayout (XLU transpose for minor-axis swaps).  No
    # in-kernel reshape: the output block already has the transposed shape and
    # the wrapper recovers the logical shape with a free HBM reshape.
    o_ref[...] = jnp.transpose(x_ref[...], dims)


def _swap_major_kernel(x_ref, o_ref):
    # Lane axis untouched: x (tA, tS, L) -> o (tS, tA, L) is pure data
    # movement.  tS is capped at 8, so this unrolls into a handful of slab
    # copies with dense, unmasked stores; the sublane-strided loads stay
    # hidden under the HBM DMAs (the kernel is memory-bound).
    for j in range(x_ref.shape[1]):
        o_ref[j] = x_ref[:, j, :]


# ---------------------------------------------------------------------------
# pallas_call drivers.
# ---------------------------------------------------------------------------
def _permute_whole(xc, c_dims):
    """Single grid-less invocation (small arrays, minor-swap form only)."""
    c_out = tuple(xc.shape[d] for d in c_dims)
    return pl.pallas_call(
        functools.partial(_transpose_kernel, dims=c_dims),
        out_shape=jax.ShapeDtypeStruct(c_out, xc.dtype),
        in_specs=[pl.BlockSpec(memory_space=pltpu.MemorySpace.VMEM)],
        out_specs=pl.BlockSpec(memory_space=pltpu.MemorySpace.VMEM),
        compiler_params=pltpu.CompilerParams(
            vmem_limit_bytes=_vmem_limit_bytes()),
    )(xc)


def _permute_grid(xc, c_dims, budget):
    """Pipelined relayout with bounded, (8,128)-aligned blocks."""
    c_shape = xc.shape
    nd = len(c_shape)
    itemsize = xc.dtype.itemsize
    in_sub, in_lane = nd - 2, nd - 1
    out_sub, out_lane = c_dims[-2], c_dims[-1]
    lane_fixed = out_lane == in_lane

    # Tile every axis that sits in a lane/sublane slot of either the input or
    # the output block, so both the load and the store stay dense; all other
    # axes are squeezed (block size 1) and iterated by the grid.
    blocked = sorted({in_sub, in_lane, out_sub, out_lane})
    multiples = {a: (128 if a in (in_lane, out_lane) else 8) for a in blocked}
    # When the lane axis is untouched the input-sublane tile only sets the
    # unroll count of the slab-copy body; 8 rows already keeps both DMAs dense.
    maximums = {in_sub: 8} if lane_fixed else None
    tiles = _choose_tiles(c_shape, blocked, multiples, itemsize, budget,
                          maximums)

    # Grid: one dimension per tiled axis with >1 block and per squeezed axis;
    # largest extent first so v7x's two TensorCores split the biggest axis.
    grid_axes = []
    for a in range(nd):
        nb = pl.cdiv(c_shape[a], tiles[a]) if a in tiles else c_shape[a]
        if nb > 1:
            grid_axes.append((a, nb))
    grid_axes.sort(key=lambda t: t[1], reverse=True)
    grid = tuple(nb for _, nb in grid_axes) or (1,)
    axis_to_grid = {a: g for g, (a, _) in enumerate(grid_axes)}

    def in_index(*g):
        return tuple(g[axis_to_grid[a]] if a in axis_to_grid else 0
                     for a in range(nd))

    def out_index(*g):
        return tuple(g[axis_to_grid[c_dims[j]]] if c_dims[j] in axis_to_grid
                     else 0 for j in range(nd))

    in_block = tuple(tiles.get(a) for a in range(nd))        # None => squeezed
    out_block = tuple(tiles.get(c_dims[j]) for j in range(nd))

    # Relative permutation between the squeezed input / output block views.
    in_order = [a for a in range(nd) if a in tiles]
    out_order = [c_dims[j] for j in range(nd) if c_dims[j] in tiles]
    rel = tuple(in_order.index(a) for a in out_order)
    if lane_fixed and rel == (1, 0, 2):
        kernel = _swap_major_kernel                 # pure copy, no XLU work
    else:
        # rel == (1, 0): blocked XLU transpose (minor-axis swap) -- the common
        # case (NCHW<->NHWC, matrix transpose, last-axis-to-front).
        # TODO(synk): exotic coalesced permutations (3-4 moving layout axes)
        # rely on Mosaic's generic transpose lowering; decompose into two
        # minor-swap passes if that ever turns out to be unsupported.
        kernel = functools.partial(_transpose_kernel, dims=rel)

    c_out = tuple(c_shape[d] for d in c_dims)
    return pl.pallas_call(
        kernel,
        out_shape=jax.ShapeDtypeStruct(c_out, xc.dtype),
        grid=grid,
        in_specs=[pl.BlockSpec(in_block, in_index)],
        out_specs=pl.BlockSpec(out_block, out_index),
        compiler_params=pltpu.CompilerParams(
            dimension_semantics=("parallel",) * len(grid),
            vmem_limit_bytes=_vmem_limit_bytes()),
    )(xc)


def _permute_core(x, dims):
    out_shape = tuple(x.shape[d] for d in dims)
    c_shape, c_dims = _coalesce(x.shape, dims)
    nd = len(c_dims)
    if c_dims == tuple(range(nd)):
        return x.reshape(out_shape)               # degenerates to a free reshape
    xc = x.reshape(c_shape)
    budget = _block_budget_bytes()
    small = x.size * x.dtype.itemsize <= budget
    minor_swap = c_dims == tuple(range(nd - 2)) + (nd - 1, nd - 2)
    if small and minor_swap:
        outc = _permute_whole(xc, c_dims)
    else:
        outc = _permute_grid(xc, c_dims, budget)
    return outc.reshape(out_shape)


@functools.partial(jax.jit, static_argnames=("dims",))
def _permute_impl(x, dims):
    if x.size == 0:
        return jnp.transpose(x, dims)             # nothing to move
    xw, dims_w, unpack = _maybe_pack_minor(x, dims)
    out = _permute_core(xw, dims_w)
    return unpack(out) if unpack is not None else out


def permute_pallas(x, dims):
    """Pallas equivalent of `torch.Tensor.permute(*dims)` (negative dims ok)."""
    ndim = x.ndim
    dims = tuple(int(d) for d in dims)
    if ndim == 0:
        if dims:
            raise ValueError(f"dims {dims} is not a permutation of 0 axes")
        return x
    if any(not -ndim <= d < ndim for d in dims):
        raise ValueError(f"dim out of range in {dims} for a {ndim}-D input")
    dims = tuple(d % ndim for d in dims)
    if sorted(dims) != list(range(ndim)):
        raise ValueError(f"dims {dims} is not a permutation of {ndim} axes")
    if dims == tuple(range(ndim)):
        return x                                  # identity permute is a view
    return _permute_impl(x, dims=dims)


class PermuteLayer:
    """JAX/Pallas port of model/residual.py::PermuteLayer."""

    def __init__(self, *dims):
        self.dims = tuple(int(d) for d in dims)

    def __call__(self, x):
        return permute_pallas(x, self.dims)


if __name__ == "__main__":
    root = jax.random.PRNGKey(0)
    k1, k2, k3, k4, k5 = jax.random.split(root, 5)

    # 1) NCHW -> NHWC at the module's natural small shapes (whole-array path).
    x = jax.random.normal(k1, (2, 4, 16, 16), dtype=jnp.float32)
    out = jax.block_until_ready(PermuteLayer(0, 2, 3, 1)(x))
    ref = jnp.transpose(x, (0, 2, 3, 1))
    assert out.shape == ref.shape and out.dtype == ref.dtype
    assert jnp.array_equal(out, ref), "NCHW->NHWC mismatch"

    # 2) Last axis to the front (coalesces to a small 2-D minor transpose).
    y = jax.random.normal(k2, (8, 4, 32), dtype=jnp.float32)
    assert jnp.array_equal(jax.block_until_ready(PermuteLayer(2, 0, 1)(y)),
                           jnp.transpose(y, (2, 0, 1)))

    # 3) Identity permutation and negative dims (torch semantics).
    assert jnp.array_equal(jax.block_until_ready(PermuteLayer(0, 1, 2, 3)(x)), x)
    assert jnp.array_equal(jax.block_until_ready(PermuteLayer(0, -2, -1, 1)(x)),
                           ref)

    # 4) Grid path, blocked XLU-transpose branch (16 MiB NCHW -> NHWC).
    z = jax.random.normal(k3, (4, 256, 64, 64), dtype=jnp.float32)
    assert jnp.array_equal(jax.block_until_ready(PermuteLayer(0, 2, 3, 1)(z)),
                           jnp.transpose(z, (0, 2, 3, 1)))

    # 5) Grid path, 2-D matrix transpose with both axes tiled (16 MiB).
    w = jax.random.normal(k4, (2048, 2048), dtype=jnp.float32)
    assert jnp.array_equal(jax.block_until_ready(PermuteLayer(1, 0)(w)), w.T)

    # 6) Grid path, pure-copy (lane untouched) branch with bf16 lane packing.
    v = jax.random.normal(k5, (8, 32, 64, 512), dtype=jnp.bfloat16)
    assert jnp.array_equal(jax.block_until_ready(PermuteLayer(0, 2, 1, 3)(v)),
                           jnp.transpose(v, (0, 2, 1, 3)))

    print("KERNEL_OK")
</pallas_src>

<mosaic_0001>
module attributes {stable_mosaic.version = 11 : i64} {
  func.func @_transpose_kernel(%arg0: memref<2x4x256xf32, #tpu.memory_space<vmem>>, %arg1: memref<2x256x4xf32, #tpu.memory_space<vmem>>) attributes {dimension_semantics = [], scalar_prefetch = 0 : i64, scratch_operands = 0 : i64, tpu.core_type = #tpu.core_type<tc>} {
    %c0 = arith.constant 0 : index
    %c0_0 = arith.constant 0 : index
    %c0_1 = arith.constant 0 : index
    %0 = vector.load %arg0[%c0, %c0_0, %c0_1] : memref<2x4x256xf32, #tpu.memory_space<vmem>>, vector<2x4x256xf32>
    %1 = tpu.transpose %0, [0, 2, 1] : vector<2x4x256xf32> -> vector<2x256x4xf32>
    %c0_2 = arith.constant 0 : index
    %c0_3 = arith.constant 0 : index
    %c0_4 = arith.constant 0 : index
    %2 = vector.load %arg1[%c0_2, %c0_3, %c0_4] : memref<2x256x4xf32, #tpu.memory_space<vmem>>, vector<2x256x4xf32>
    tpu.vector_store %arg1[%c0_2, %c0_3, %c0_4], %1 {strides = array<i32>} : memref<2x256x4xf32, #tpu.memory_space<vmem>>, vector<2x256x4xf32>,
    return
  }
}

</mosaic_0001>

<bundles_post_ra>
// kernel: _permute_impl.1
= control target key start
LH: loop header
LB: loop body
LE: loop exit
PB: predicated region body
PF: predicated region fallthrough
CT: control target
= control target key end

     0   :  { %6 = vsyncpa [#allocation3], 0  ;;  %s404_s0 = inlined_call_operand.hbm [shape: f32[2,4,256], index: 0, kind: input, shape index: {}]   ;;  %s405_s1 = inlined_call_operand.hbm [shape: f32[2,256,4], index: 1, kind: output, shape index: {}]  }
   0x1   :  { %7 = vsyncpa [#allocation4], 0  ;;  %s296_s6 = smov [#allocation2]   ;;  %s248_s10 = scalar_lea.hbm %s404_s0, 256 }
   0x2   :  { %s13_s7 = sshll.u32 %s296_s6, 4  ;;  %p249_p0 = scmp.ne.s32.totalorder %s404_s0, %s248_s10  ;;  %s14_s7 = int_to_ptr.vmem [resolvable:$true] %s13_s7 }
   0x3   :  { %p252_p1 = scmp.lt.u32.totalorder %s248_s10, %s404_s0 }
   0x5   :  { %p254_p2 = pnand %p252_p1, %p249_p0 }
   0x7   :  { %257 = shalt.err (!%p254_p2)
}
   0x8   :  { %s258_s15 = scalar_lea.vmem %s14_s7, 256  ;;  %p263_p4 = scmp.lt.s32.totalorder %s14_s7, %s14_s7 }
   0x9   :  { %p259_p3 = scmp.ne.s32.totalorder %s14_s7, %s258_s15  ;;  %p264_p5 = scmp.lt.s32.totalorder %s258_s15, %s258_s15 }
   0xb   :  { %p265_p6 = por %p264_p5, %p263_p4 }
   0xd   :  { %p266_p7 = pnand %p265_p6, %p259_p3 }
   0xf   :  { %269 = shalt.err (!%p266_p7)
}
  0x10   :  { %s297_s16 = smov 128   ;;  %s298_s17 = smov 8  }
  0x11   :  { %19 = dma.hbm_to_vmem [thread:$0]  %s404_s0, 256, %s14_s7, [#allocation3], %s297_s16, %s297_s16, %s298_s17  }
  0x12   :  { %292 = dma.done.wait [#allocation3], 256  }
  0x13   :  { %293 = vsyncadd [#allocation3], 4294967040  ;;  %v24_v0 = vld [vmem:[#allocation2 + $0x8] sm:$0xff]  ;;  %v23_v1 = vld [vmem:[#allocation2] sm:$0xff]  ;;  %vm159_vm0 = vcmask 31744   ;;  %s299_s0 = smov [#allocation5]  }
  0x14   :  { %95 = vxpose.xlu1.b32.start.end [1/1] (short) %v24_v0, 128  ;;  %31 = vxpose.xlu0.b32.start.end [1/1] (short) %v23_v1, 128  ;;  %v28_v2 = vcombine.high %v24_v0, %v24_v0  ;;  %v27_v3 = vcombine.high %v23_v1, %v23_v1  ;;  %s229_s20 = sshll.u32 %s299_s0, 4  ;;  %s230_s20 = int_to_ptr.vmem [resolvable:$true] %s229_s20 }
  0x15   :  { %s270_s21 = scalar_lea.vmem %s230_s20, 8192  ;;  %p275_p9 = scmp.lt.s32.totalorder %s230_s20, %s230_s20 }
  0x16   :  { %p271_p8 = scmp.ne.s32.totalorder %s230_s20, %s270_s21  ;;  %p276_p10 = scmp.lt.s32.totalorder %s270_s21, %s270_s21 }
  0x18   :  { %p277_p11 = por %p276_p10, %p275_p9 }
  0x1a   :  { %p278_p12 = pnand %p277_p11, %p271_p8 }
  0x51   :  { %127 = vxpose.xlu1.b32.start.end [1/1] (short) %v28_v2, 128  ;;  %63 = vxpose.xlu0.b32.start.end [1/1] (short) %v27_v3, 128 }
  0x94   :  { %v111_v4 = vpop.trf.xlu1  ;;  %v47_v5 = vpop.trf.xlu0 }
  0x95   :  { %192 = vst.msk [vmem:[#allocation5 + $0x100] sm:$0xff] %vm159_vm0, %v111_v4  ;;  %160 = vst.msk [vmem:[#allocation5] sm:$0xff] %vm159_vm0, %v47_v5 }
  0x98   :  { %v112_v6 = vpop.trf.xlu1  ;;  %v48_v7 = vpop.trf.xlu0 }
  0x99   :  { %193 = vst.msk [vmem:[#allocation5 + $0x108] sm:$0xff] %vm159_vm0, %v112_v6  ;;  %161 = vst.msk [vmem:[#allocation5 + $0x8] sm:$0xff] %vm159_vm0, %v48_v7 }
  0x9c   :  { %v113_v8 = vpop.trf.xlu1  ;;  %v49_v9 = vpop.trf.xlu0 }
  0x9d   :  { %194 = vst.msk [vmem:[#allocation5 + $0x110] sm:$0xff] %vm159_vm0, %v113_v8  ;;  %162 = vst.msk [vmem:[#allocation5 + $0x10] sm:$0xff] %vm159_vm0, %v49_v9 }
  0xa0   :  { %v114_v10 = vpop.trf.xlu1  ;;  %v50_v11 = vpop.trf.xlu0 }
  0xa1   :  { %195 = vst.msk [vmem:[#allocation5 + $0x118] sm:$0xff] %vm159_vm0, %v114_v10  ;;  %163 = vst.msk [vmem:[#allocation5 + $0x18] sm:$0xff] %vm159_vm0, %v50_v11 }
  0xa4   :  { %v115_v12 = vpop.trf.xlu1  ;;  %v51_v13 = vpop.trf.xlu0 }
  0xa5   :  { %196 = vst.msk [vmem:[#allocation5 + $0x120] sm:$0xff] %vm159_vm0, %v115_v12  ;;  %164 = vst.msk [vmem:[#allocation5 + $0x20] sm:$0xff] %vm159_vm0, %v51_v13 }
  0xa8   :  { %v116_v14 = vpop.trf.xlu1  ;;  %v52_v15 = vpop.trf.xlu0 }
  0xa9   :  { %197 = vst.msk [vmem:[#allocation5 + $0x128] sm:$0xff] %vm159_vm0, %v116_v14  ;;  %165 = vst.msk [vmem:[#allocation5 + $0x28] sm:$0xff] %vm159_vm0, %v52_v15 }
  0xac   :  { %v117_v16 = vpop.trf.xlu1  ;;  %v53_v17 = vpop.trf.xlu0 }
  0xad   :  { %198 = vst.msk [vmem:[#allocation5 + $0x130] sm:$0xff] %vm159_vm0, %v117_v16  ;;  %166 = vst.msk [vmem:[#allocation5 + $0x30] sm:$0xff] %vm159_vm0, %v53_v17 }
  0xb0   :  { %v118_v18 = vpop.trf.xlu1  ;;  %v54_v19 = vpop.trf.xlu0 }
  0xb1   :  { %199 = vst.msk [vmem:[#allocation5 + $0x138] sm:$0xff] %vm159_vm0, %v118_v18  ;;  %167 = vst.msk [vmem:[#allocation5 + $0x38] sm:$0xff] %vm159_vm0, %v54_v19 }
  0xb4   :  { %v119_v20 = vpop.trf.xlu1  ;;  %v55_v21 = vpop.trf.xlu0 }
  0xb5   :  { %200 = vst.msk [vmem:[#allocation5 + $0x140] sm:$0xff] %vm159_vm0, %v119_v20  ;;  %168 = vst.msk [vmem:[#allocation5 + $0x40] sm:$0xff] %vm159_vm0, %v55_v21 }
  0xb8   :  { %v120_v22 = vpop.trf.xlu1  ;;  %v56_v23 = vpop.trf.xlu0 }
  0xb9   :  { %201 = vst.msk [vmem:[#allocation5 + $0x148] sm:$0xff] %vm159_vm0, %v120_v22  ;;  %169 = vst.msk [vmem:[#allocation5 + $0x48] sm:$0xff] %vm159_vm0, %v56_v23 }
  0xbc   :  { %v121_v24 = vpop.trf.xlu1  ;;  %v57_v25 = vpop.trf.xlu0 }
  0xbd   :  { %202 = vst.msk [vmem:[#allocation5 + $0x150] sm:$0xff] %vm159_vm0, %v121_v24  ;;  %170 = vst.msk [vmem:[#allocation5 + $0x50] sm:$0xff] %vm159_vm0, %v57_v25 }
  0xc0   :  { %v122_v26 = vpop.trf.xlu1  ;;  %v58_v27 = vpop.trf.xlu0 }
  0xc1   :  { %203 = vst.msk [vmem:[#allocation5 + $0x158] sm:$0xff] %vm159_vm0, %v122_v26  ;;  %171 = vst.msk [vmem:[#allocation5 + $0x58] sm:$0xff] %vm159_vm0, %v58_v27 }
  0xc4   :  { %v123_v28 = vpop.trf.xlu1  ;;  %v59_v29 = vpop.trf.xlu0 }
  0xc5   :  { %204 = vst.msk [vmem:[#allocation5 + $0x160] sm:$0xff] %vm159_vm0, %v123_v28  ;;  %172 = vst.msk [vmem:[#allocation5 + $0x60] sm:$0xff] %vm159_vm0, %v59_v29 }
  0xc8   :  { %v124_v30 = vpop.trf.xlu1  ;;  %v60_v31 = vpop.trf.xlu0 }
  0xc9   :  { %205 = vst.msk [vmem:[#allocation5 + $0x168] sm:$0xff] %vm159_vm0, %v124_v30  ;;  %173 = vst.msk [vmem:[#allocation5 + $0x68] sm:$0xff] %vm159_vm0, %v60_v31 }
  0xcc   :  { %v125_v32 = vpop.trf.xlu1  ;;  %v61_v33 = vpop.trf.xlu0 }
  0xcd   :  { %206 = vst.msk [vmem:[#allocation5 + $0x170] sm:$0xff] %vm159_vm0, %v125_v32  ;;  %174 = vst.msk [vmem:[#allocation5 + $0x70] sm:$0xff] %vm159_vm0, %v61_v33 }
  0xd0   :  { %v126_v34 = vpop.trf.xlu1  ;;  %v62_v35 = vpop.trf.xlu0 }
  0xd1   :  { %207 = vst.msk [vmem:[#allocation5 + $0x178] sm:$0xff] %vm159_vm0, %v126_v34  ;;  %175 = vst.msk [vmem:[#allocation5 + $0x78] sm:$0xff] %vm159_vm0, %v62_v35 }
  0xd4   :  { %v143_v36 = vpop.trf.xlu1  ;;  %v79_v37 = vpop.trf.xlu0 }
  0xd5   :  { %208 = vst.msk [vmem:[#allocation5 + $0x180] sm:$0xff] %vm159_vm0, %v143_v36  ;;  %176 = vst.msk [vmem:[#allocation5 + $0x80] sm:$0xff] %vm159_vm0, %v79_v37 }
  0xd8   :  { %v144_v38 = vpop.trf.xlu1  ;;  %v80_v39 = vpop.trf.xlu0 }
  0xd9   :  { %209 = vst.msk [vmem:[#allocation5 + $0x188] sm:$0xff] %vm159_vm0, %v144_v38  ;;  %177 = vst.msk [vmem:[#allocation5 + $0x88] sm:$0xff] %vm159_vm0, %v80_v39 }
  0xdc   :  { %v145_v40 = vpop.trf.xlu1  ;;  %v81_v41 = vpop.trf.xlu0 }
  0xdd   :  { %210 = vst.msk [vmem:[#allocation5 + $0x190] sm:$0xff] %vm159_vm0, %v145_v40  ;;  %178 = vst.msk [vmem:[#allocation5 + $0x90] sm:$0xff] %vm159_vm0, %v81_v41 }
  0xe0   :  { %v146_v42 = vpop.trf.xlu1  ;;  %v82_v43 = vpop.trf.xlu0 }
  0xe1   :  { %211 = vst.msk [vmem:[#allocation5 + $0x198] sm:$0xff] %vm159_vm0, %v146_v42  ;;  %179 = vst.msk [vmem:[#allocation5 + $0x98] sm:$0xff] %vm159_vm0, %v82_v43 }
  0xe4   :  { %v147_v44 = vpop.trf.xlu1  ;;  %v83_v45 = vpop.trf.xlu0 }
  0xe5   :  { %212 = vst.msk [vmem:[#allocation5 + $0x1a0] sm:$0xff] %vm159_vm0, %v147_v44  ;;  %180 = vst.msk [vmem:[#allocation5 + $0xa0] sm:$0xff] %vm159_vm0, %v83_v45 }
  0xe8   :  { %v148_v46 = vpop.trf.xlu1  ;;  %v84_v47 = vpop.trf.xlu0 }
  0xe9   :  { %213 = vst.msk [vmem:[#allocation5 + $0x1a8] sm:$0xff] %vm159_vm0, %v148_v46  ;;  %181 = vst.msk [vmem:[#allocation5 + $0xa8] sm:$0xff] %vm159_vm0, %v84_v47 }
  0xec   :  { %v149_v48 = vpop.trf.xlu1  ;;  %v85_v49 = vpop.trf.xlu0 }
  0xed   :  { %214 = vst.msk [vmem:[#allocation5 + $0x1b0] sm:$0xff] %vm159_vm0, %v149_v48  ;;  %182 = vst.msk [vmem:[#allocation5 + $0xb0] sm:$0xff] %vm159_vm0, %v85_v49 }
  0xf0   :  { %v150_v50 = vpop.trf.xlu1  ;;  %v86_v51 = vpop.trf.xlu0 }
  0xf1   :  { %215 = vst.msk [vmem:[#allocation5 + $0x1b8] sm:$0xff] %vm159_vm0, %v150_v50  ;;  %183 = vst.msk [vmem:[#allocation5 + $0xb8] sm:$0xff] %vm159_vm0, %v86_v51 }
  0xf4   :  { %v151_v52 = vpop.trf.xlu1  ;;  %v87_v53 = vpop.trf.xlu0 }
  0xf5   :  { %216 = vst.msk [vmem:[#allocation5 + $0x1c0] sm:$0xff] %vm159_vm0, %v151_v52  ;;  %184 = vst.msk [vmem:[#allocation5 + $0xc0] sm:$0xff] %vm159_vm0, %v87_v53 }
  0xf8   :  { %v152_v54 = vpop.trf.xlu1  ;;  %v88_v55 = vpop.trf.xlu0 }
  0xf9   :  { %217 = vst.msk [vmem:[#allocation5 + $0x1c8] sm:$0xff] %vm159_vm0, %v152_v54  ;;  %185 = vst.msk [vmem:[#allocation5 + $0xc8] sm:$0xff] %vm159_vm0, %v88_v55 }
  0xfc   :  { %v153_v56 = vpop.trf.xlu1  ;;  %v89_v57 = vpop.trf.xlu0 }
  0xfd   :  { %218 = vst.msk [vmem:[#allocation5 + $0x1d0] sm:$0xff] %vm159_vm0, %v153_v56  ;;  %186 = vst.msk [vmem:[#allocation5 + $0xd0] sm:$0xff] %vm159_vm0, %v89_v57 }
 0x100   :  { %v154_v58 = vpop.trf.xlu1  ;;  %v90_v59 = vpop.trf.xlu0 }
 0x101   :  { %219 = vst.msk [vmem:[#allocation5 + $0x1d8] sm:$0xff] %vm159_vm0, %v154_v58  ;;  %187 = vst.msk [vmem:[#allocation5 + $0xd8] sm:$0xff] %vm159_vm0, %v90_v59 }
 0x104   :  { %v155_v60 = vpop.trf.xlu1  ;;  %v91_v61 = vpop.trf.xlu0 }
 0x105   :  { %220 = vst.msk [vmem:[#allocation5 + $0x1e0] sm:$0xff] %vm159_vm0, %v155_v60  ;;  %188 = vst.msk [vmem:[#allocation5 + $0xe0] sm:$0xff] %vm159_vm0, %v91_v61 }
 0x108   :  { %v156_v62 = vpop.trf.xlu1  ;;  %v92_v63 = vpop.trf.xlu0 }
 0x109   :  { %221 = vst.msk [vmem:[#allocation5 + $0x1e8] sm:$0xff] %vm159_vm0, %v156_v62  ;;  %189 = vst.msk [vmem:[#allocation5 + $0xe8] sm:$0xff] %vm159_vm0, %v92_v63 }
 0x10c   :  { %v157_v0 = vpop.trf.xlu1  ;;  %v93_v1 = vpop.trf.xlu0 }
 0x10d   :  { %222 = vst.msk [vmem:[#allocation5 + $0x1f0] sm:$0xff] %vm159_vm0, %v157_v0  ;;  %190 = vst.msk [vmem:[#allocation5 + $0xf0] sm:$0xff] %vm159_vm0, %v93_v1 }
 0x110   :  { %v158_v2 = vpop.trf.xlu1  ;;  %v94_v3 = vpop.trf.xlu0 }
 0x111   :  { %223 = vst.msk [vmem:[#allocation5 + $0x1f8] sm:$0xff] %vm159_vm0, %v158_v2  ;;  %191 = vst.msk [vmem:[#allocation5 + $0xf8] sm:$0xff] %vm159_vm0, %v94_v3 }
 0x112   :  { %281 = shalt.err (!%p278_p12)
}
 0x113   :  { %s282_s24 = scalar_lea.hbm %s405_s1, 8192 }
 0x114   :  { %p283_p13 = scmp.ne.s32.totalorder %s405_s1, %s282_s24  ;;  %p286_p0 = scmp.lt.u32.totalorder %s282_s24, %s405_s1 }
 0x116   :  { %p288_p1 = pnand %p286_p0, %p283_p13 }
 0x118   :  { %291 = shalt.err (!%p288_p1)
}
 0x119   :  { %235 = dma.vmem_to_hbm [thread:$0]  %s230_s20, 8192, %s405_s1, [#allocation4], %s297_s16, %s297_s16, %s298_s17  }
 0x11a   :  { %294 = dma.done.wait [#allocation4], 8192  }
 0x11b   :  { %295 = vsyncadd [#allocation4], 4294959104 }
 0x11c   :  { %239 = vsyncpa [#allocation3], 1 }
 0x11d   :  { %240 = vsyncpa [#allocation4], 1 }

</bundles_post_ra>
